<compile_context>
chip_gen: v7x
topology: tpu7x:2x2x1
jax: 0.10.0
libtpu: 0.0.40
codegen_flags: <defaults>
</compile_context>

<pallas_src>
import jax
import jax.numpy as jnp
from jax.experimental import pallas as pl
from jax.experimental.pallas import tpu as pltpu


def _hbm_copy_kernel(x_hbm_ref, o_hbm_ref, sem):
    # One large HBM->HBM DMA of the whole (already-squeezed-shape) array.
    cp = pltpu.make_async_copy(x_hbm_ref, o_hbm_ref, sem)
    cp.start()
    cp.wait()


def _pallas_materialized_copy(x: jax.Array) -> jax.Array:
    """Identity copy into a fresh buffer via a single HBM->HBM DMA."""
    return pl.pallas_call(
        _hbm_copy_kernel,
        out_shape=jax.ShapeDtypeStruct(x.shape, x.dtype),
        in_specs=[pl.BlockSpec(memory_space=pl.ANY)],
        out_specs=pl.BlockSpec(memory_space=pl.ANY),
        scratch_shapes=[pltpu.SemaphoreType.DMA],
    )(x)


def squeeze_last(x: jax.Array, *, force_materialize: bool = False) -> jax.Array:
    """Equivalent of PyTorch x.squeeze(-1).

    Default: metadata-only (zero HBM traffic). Set force_materialize=True to
    get a freshly materialized (non-aliasing) copy via the Pallas DMA kernel.
    """
    if x.ndim == 0 or x.shape[-1] != 1:
        # squeeze(-1) is a no-op when the last dim is not 1.
        return x

    out_shape = x.shape[:-1]
    squeezed = jnp.reshape(x, out_shape)  # pure metadata, zero traffic

    if not force_materialize or squeezed.size == 0 or squeezed.ndim == 0:
        return squeezed

    return _pallas_materialized_copy(squeezed)


if __name__ == "__main__":
    key = jax.random.PRNGKey(0)

    # Typical use in vit_new.py: a (batch, heads, tokens, 1) score tensor.
    x = jax.random.normal(key, (2, 4, 16, 1), dtype=jnp.float32)

    # Default path: metadata-only squeeze (recommended).
    y = jax.block_until_ready(squeeze_last(x))
    y_ref = jnp.squeeze(x, axis=-1)
    assert y.shape == (2, 4, 16), y.shape
    assert jnp.array_equal(y, y_ref)

    # Explicitly materialized copy through the Pallas HBM->HBM DMA kernel.
    y_mat = jax.block_until_ready(squeeze_last(x, force_materialize=True))
    assert y_mat.shape == (2, 4, 16), y_mat.shape
    assert jnp.array_equal(y_mat, y_ref)

    # bf16 path through the DMA kernel.
    xb = jax.random.normal(jax.random.PRNGKey(1), (2, 8, 32, 1), dtype=jnp.bfloat16)
    yb = jax.block_until_ready(squeeze_last(xb, force_materialize=True))
    assert yb.shape == (2, 8, 32), yb.shape
    assert jnp.array_equal(yb, jnp.squeeze(xb, axis=-1))

    # Irregular shape (metadata path handles any shape with zero traffic).
    x3 = jax.random.normal(jax.random.PRNGKey(2), (3, 5, 7, 1), dtype=jnp.float32)
    y3 = jax.block_until_ready(squeeze_last(x3))
    assert y3.shape == (3, 5, 7), y3.shape
    assert jnp.array_equal(y3, jnp.squeeze(x3, axis=-1))

    # No-op path (last dim != 1), matching torch semantics.
    x2 = jax.random.normal(jax.random.PRNGKey(3), (2, 8, 16), dtype=jnp.float32)
    y2 = jax.block_until_ready(squeeze_last(x2))
    assert y2.shape == x2.shape
    assert jnp.array_equal(y2, x2)

    print("KERNEL_OK")
</pallas_src>

<mosaic_0001>
module attributes {stable_mosaic.version = 11 : i64} {
  func.func @_hbm_copy_kernel(%arg0: memref<2x4x16xf32, #tpu.memory_space<any>>, %arg1: memref<2x4x16xf32, #tpu.memory_space<any>>, %arg2: memref<!tpu.dma_semaphore, #tpu.memory_space<semaphore_mem>>) attributes {dimension_semantics = [], scalar_prefetch = 0 : i64, scratch_operands = 1 : i64, tpu.core_type = #tpu.core_type<tc>} {
    tpu.enqueue_dma source(%arg0 : memref<2x4x16xf32, #tpu.memory_space<any>>) target(%arg1 : memref<2x4x16xf32, #tpu.memory_space<any>>) target_semaphore(%arg2 : memref<!tpu.dma_semaphore, #tpu.memory_space<semaphore_mem>>)
    tpu.wait_dma2 semaphore(%arg2 : memref<!tpu.dma_semaphore, #tpu.memory_space<semaphore_mem>>) src(%arg0 : memref<2x4x16xf32, #tpu.memory_space<any>>) dst(%arg1 : memref<2x4x16xf32, #tpu.memory_space<any>>)
    return
  }
}

</mosaic_0001>

<bundles_post_ra>
// kernel: tpu_custom_call.1
= control target key start
LH: loop header
LB: loop body
LE: loop exit
PB: predicated region body
PF: predicated region fallthrough
CT: control target
= control target key end

     0   :  { %s35_s6 = smov [#allocation2]   ;;  %s36_s7 = smov [#allocation3]   ;;  %s54_s0 = inlined_call_operand.hbm [shape: f32[2,4,16], index: 0, kind: input, shape index: {}]   ;;  %s55_s1 = inlined_call_operand.hbm [shape: f32[2,4,16], index: 1, kind: output, shape index: {}]  }
   0x1   :  { %s37_s8 = smov 0  }
   0x2   :  { %18 = dma.general %s54_s0, 128, %s55_s1, %s35_s6, %s36_s7, [#allocation4], %s37_s8, 0  }
   0x3   :  { %33 = dma.done.wait [#allocation2], 128 }
   0x4   :  { %34 = vsyncadd [#allocation2], 4294967168 }
   0x5   :  { %23 = vsyncmov [#allocation2] }
   0x8   :  { %s24_s13 = vpop.sfrf %23 }
   0x9   :  { %p29_p0 = scmp.ne.s32.totalorder %s24_s13, 0 }
   0xb   :  { %28 = shalt.err (%p29_p0)  }

</bundles_post_ra>
